<compile_context>
chip_gen: v7x
topology: tpu7x:2x2x1
jax: 0.10.0
libtpu: 0.0.40
codegen_flags: <defaults>
</compile_context>

<pallas_src>
import jax
import jax.numpy as jnp
from jax.experimental import pallas as pl
from jax.experimental.pallas import tpu as pltpu

IN_FEATS = 68 * 2   # 136
HID = 256
OUT = 512

TB_MAX = 2048       # max batch-tile rows per grid step


def _round_up(n, m):
    return ((n + m - 1) // m) * m


def _lmrk_fc_kernel(x_ref, w1_ref, b1_ref, w2_ref, b2_ref, o_ref):
    # x_ref : (TB, 136) f32     w1_ref: (136, 256) bf16   b1_ref: (1, 256) f32
    # w2_ref: (256, 512) bf16   b2_ref: (1, 512)  f32     o_ref : (TB, 512) f32/bf16
    # Cast x to bf16 in-kernel (VPU, hidden under MXU/DMA) instead of in the wrapper.
    x = x_ref[...].astype(jnp.bfloat16)
    # fc1: bf16 MXU matmul, f32 accumulate, f32 bias add
    h = jnp.dot(x, w1_ref[...], preferred_element_type=jnp.float32) + b1_ref[...]
    # fc2: cast hidden activations back to bf16 for the second MXU pass
    y = jnp.dot(h.astype(jnp.bfloat16), w2_ref[...],
                preferred_element_type=jnp.float32) + b2_ref[...]
    o_ref[...] = y.astype(o_ref.dtype)


def lmrk_encoder_fc_forward(x, w1, b1, w2, b2, out_dtype=jnp.float32):
    """x: (B, 68, 2) or (B, 136) float -> (B, 512) out_dtype."""
    B = x.shape[0]
    if B == 0:
        return jnp.zeros((0, OUT), out_dtype)

    x2d = x.reshape(B, -1).astype(jnp.float32)   # glue: the .view() from the module
    assert x2d.shape[1] == IN_FEATS

    # --- batch tiling ---------------------------------------------------------
    # Rows padded to a multiple of 16 (sublane packing); whenever there is more
    # than one 16-row tile of work, force >= 2 grid steps so the "parallel"
    # batch axis shards across v7x's two TensorCores.
    B16 = _round_up(B, 16)
    if B16 <= 16:
        TB = B16
    else:
        TB = min(TB_MAX, _round_up(pl.cdiv(B16, 2), 16))
    B_pad = _round_up(B16, TB)
    num_tiles = B_pad // TB

    if B_pad != B:
        x2d = jnp.pad(x2d, ((0, B_pad - B), (0, 0)))

    # Pre-cast weights once in the wrapper (bf16 halves weight DMA bytes);
    # biases stay f32 so the bias add is native on the VPU everywhere.
    w1_bf16 = w1.astype(jnp.bfloat16)
    w2_bf16 = w2.astype(jnp.bfloat16)
    b1_f32 = b1.reshape(1, HID).astype(jnp.float32)
    b2_f32 = b2.reshape(1, OUT).astype(jnp.float32)

    out_bytes = jnp.dtype(out_dtype).itemsize
    flops = 2 * B_pad * (IN_FEATS * HID + HID * OUT)
    bytes_accessed = (
        B_pad * IN_FEATS * 4                       # x (f32)
        + (IN_FEATS * HID + HID * OUT) * 2         # weights (bf16)
        + (HID + OUT) * 4                          # biases (f32)
        + B_pad * OUT * out_bytes                  # output
    )

    out = pl.pallas_call(
        _lmrk_fc_kernel,
        out_shape=jax.ShapeDtypeStruct((B_pad, OUT), out_dtype),
        grid_spec=pl.GridSpec(
            grid=(num_tiles,),
            in_specs=[
                pl.BlockSpec((TB, IN_FEATS), lambda i: (i, 0)),   # x tile, pipelined
                pl.BlockSpec((IN_FEATS, HID), lambda i: (0, 0)),  # w1 resident
                pl.BlockSpec((1, HID), lambda i: (0, 0)),         # b1 resident
                pl.BlockSpec((HID, OUT), lambda i: (0, 0)),       # w2 resident
                pl.BlockSpec((1, OUT), lambda i: (0, 0)),         # b2 resident
            ],
            out_specs=pl.BlockSpec((TB, OUT), lambda i: (i, 0)),
        ),
        compiler_params=pltpu.CompilerParams(
            dimension_semantics=("parallel",),
            vmem_limit_bytes=32 * 1024 * 1024),
        cost_estimate=pl.CostEstimate(
            flops=flops, transcendentals=0, bytes_accessed=bytes_accessed),
    )(x2d, w1_bf16, b1_f32, w2_bf16, b2_f32)

    return out[:B]


def init_params(key):
    """Deterministic synthetic params with PyTorch Linear-style uniform init."""
    k1, k2, k3, k4 = jax.random.split(key, 4)
    bound1 = 1.0 / (IN_FEATS ** 0.5)
    bound2 = 1.0 / (HID ** 0.5)
    # stored as (in, out) so forward is x @ W
    w1 = jax.random.uniform(k1, (IN_FEATS, HID), jnp.float32, -bound1, bound1)
    b1 = jax.random.uniform(k2, (1, HID), jnp.float32, -bound1, bound1)
    w2 = jax.random.uniform(k3, (HID, OUT), jnp.float32, -bound2, bound2)
    b2 = jax.random.uniform(k4, (1, OUT), jnp.float32, -bound2, bound2)
    return w1, b1, w2, b2


def _f32_reference(x, w1, b1, w2, b2):
    B = x.shape[0]
    h = x.reshape(B, -1) @ w1 + b1
    return h @ w2 + b2


if __name__ == "__main__":
    key = jax.random.PRNGKey(0)
    kx, kp = jax.random.split(key)
    w1, b1, w2, b2 = init_params(kp)

    # primary small-shape case matching the module: batch of 68 2-D landmarks
    B = 2
    x = jax.random.normal(kx, (B, 68, 2), dtype=jnp.float32)
    out = jax.block_until_ready(lmrk_encoder_fc_forward(x, w1, b1, w2, b2))
    ref = _f32_reference(x, w1, b1, w2, b2)
    assert out.shape == (B, OUT) and out.dtype == jnp.float32
    # bf16 matmuls vs f32 reference -> relaxed tolerances
    assert jnp.allclose(out, ref, atol=5e-2, rtol=5e-2)

    # secondary case: batch not a multiple of the tile (exercises padding +
    # multi-step grid path)
    B2 = 20
    x2 = jax.random.normal(jax.random.PRNGKey(1), (B2, 68, 2), dtype=jnp.float32)
    out2 = jax.block_until_ready(lmrk_encoder_fc_forward(x2, w1, b1, w2, b2))
    ref2 = _f32_reference(x2, w1, b1, w2, b2)
    assert out2.shape == (B2, OUT)
    assert jnp.allclose(out2, ref2, atol=5e-2, rtol=5e-2)

    # optional bf16-output path (halves writeback traffic at large batch)
    out3 = jax.block_until_ready(
        lmrk_encoder_fc_forward(x2, w1, b1, w2, b2, out_dtype=jnp.bfloat16))
    assert out3.shape == (B2, OUT) and out3.dtype == jnp.bfloat16
    assert jnp.allclose(out3.astype(jnp.float32), ref2, atol=1e-1, rtol=1e-1)

    print("KERNEL_OK")
</pallas_src>

<mosaic_0001>
module attributes {stable_mosaic.version = 11 : i64} {
  func.func @_lmrk_fc_kernel(%arg0: i32, %arg1: memref<16x136xf32, #tpu.memory_space<vmem>>, %arg2: memref<136x256xbf16, #tpu.memory_space<vmem>>, %arg3: memref<1x256xf32, #tpu.memory_space<vmem>>, %arg4: memref<256x512xbf16, #tpu.memory_space<vmem>>, %arg5: memref<1x512xf32, #tpu.memory_space<vmem>>, %arg6: memref<16x512xf32, #tpu.memory_space<vmem>>) attributes {dimension_semantics = [#tpu.dimension_semantics<parallel>], iteration_bounds = array<i64: 1>, scalar_prefetch = 0 : i64, scratch_operands = 0 : i64, tpu.core_type = #tpu.core_type<tc>, window_params = [{transform_indices = @transform_0, window_bounds = array<i64: 16, 136>}, {pipeline_mode = #tpu.pipeline_mode<synchronous>, transform_indices = @transform_1, window_bounds = array<i64: 136, 256>}, {pipeline_mode = #tpu.pipeline_mode<synchronous>, transform_indices = @transform_2, window_bounds = array<i64: 1, 256>}, {pipeline_mode = #tpu.pipeline_mode<synchronous>, transform_indices = @transform_3, window_bounds = array<i64: 256, 512>}, {pipeline_mode = #tpu.pipeline_mode<synchronous>, transform_indices = @transform_4, window_bounds = array<i64: 1, 512>}, {transform_indices = @transform_5, window_bounds = array<i64: 16, 512>}]} {
    %c0 = arith.constant 0 : index
    %c0_0 = arith.constant 0 : index
    %0 = vector.load %arg1[%c0, %c0_0] : memref<16x136xf32, #tpu.memory_space<vmem>>, vector<16x136xf32>
    %1 = arith.truncf %0 : vector<16x136xf32> to vector<16x136xbf16>
    %c0_1 = arith.constant 0 : index
    %c0_2 = arith.constant 0 : index
    %2 = vector.load %arg2[%c0_1, %c0_2] : memref<136x256xbf16, #tpu.memory_space<vmem>>, vector<136x256xbf16>
    %cst = arith.constant dense<0.000000e+00> : vector<16x256xf32>
    %3 = tpu.matmul %1, %2, %cst {dimension_numbers = #tpu.dot_dimension_numbers<[1], [0], [0], [1], [0, 0, 1, 1], [], []>} : vector<16x136xbf16>, vector<136x256xbf16>, vector<16x256xf32> -> vector<16x256xf32>
    %c0_3 = arith.constant 0 : index
    %c0_4 = arith.constant 0 : index
    %4 = vector.load %arg3[%c0_3, %c0_4] : memref<1x256xf32, #tpu.memory_space<vmem>>, vector<1x256xf32>
    %5 = vector.broadcast %4 : vector<1x256xf32> to vector<16x256xf32>
    %6 = arith.addf %3, %5 : vector<16x256xf32>
    %7 = arith.truncf %6 : vector<16x256xf32> to vector<16x256xbf16>
    %c0_5 = arith.constant 0 : index
    %c0_6 = arith.constant 0 : index
    %8 = vector.load %arg4[%c0_5, %c0_6] : memref<256x512xbf16, #tpu.memory_space<vmem>>, vector<256x512xbf16>
    %cst_7 = arith.constant dense<0.000000e+00> : vector<16x512xf32>
    %9 = tpu.matmul %7, %8, %cst_7 {dimension_numbers = #tpu.dot_dimension_numbers<[1], [0], [0], [1], [0, 0, 1, 1], [], []>} : vector<16x256xbf16>, vector<256x512xbf16>, vector<16x512xf32> -> vector<16x512xf32>
    %c0_8 = arith.constant 0 : index
    %c0_9 = arith.constant 0 : index
    %10 = vector.load %arg5[%c0_8, %c0_9] : memref<1x512xf32, #tpu.memory_space<vmem>>, vector<1x512xf32>
    %11 = vector.broadcast %10 : vector<1x512xf32> to vector<16x512xf32>
    %12 = arith.addf %9, %11 : vector<16x512xf32>
    %c0_10 = arith.constant 0 : index
    %c0_11 = arith.constant 0 : index
    %13 = vector.load %arg6[%c0_10, %c0_11] : memref<16x512xf32, #tpu.memory_space<vmem>>, vector<16x512xf32>
    tpu.vector_store %arg6[%c0_10, %c0_11], %12 {strides = array<i32>} : memref<16x512xf32, #tpu.memory_space<vmem>>, vector<16x512xf32>,
    return
  }
  func.func @transform_0(%arg0: i32) -> (i32, i32) {
    %c0_i32 = arith.constant 0 : i32
    %c0_i32_0 = arith.constant 0 : i32
    return %arg0, %c0_i32 : i32, i32
  }
  func.func @transform_1(%arg0: i32) -> (i32, i32) {
    %c0_i32 = arith.constant 0 : i32
    %c0_i32_0 = arith.constant 0 : i32
    %c0_i32_1 = arith.constant 0 : i32
    return %c0_i32, %c0_i32_0 : i32, i32
  }
  func.func @transform_2(%arg0: i32) -> (i32, i32) {
    %c0_i32 = arith.constant 0 : i32
    %c0_i32_0 = arith.constant 0 : i32
    %c0_i32_1 = arith.constant 0 : i32
    return %c0_i32, %c0_i32_0 : i32, i32
  }
  func.func @transform_3(%arg0: i32) -> (i32, i32) {
    %c0_i32 = arith.constant 0 : i32
    %c0_i32_0 = arith.constant 0 : i32
    %c0_i32_1 = arith.constant 0 : i32
    return %c0_i32, %c0_i32_0 : i32, i32
  }
  func.func @transform_4(%arg0: i32) -> (i32, i32) {
    %c0_i32 = arith.constant 0 : i32
    %c0_i32_0 = arith.constant 0 : i32
    %c0_i32_1 = arith.constant 0 : i32
    return %c0_i32, %c0_i32_0 : i32, i32
  }
  func.func @transform_5(%arg0: i32) -> (i32, i32) {
    %c0_i32 = arith.constant 0 : i32
    %c0_i32_0 = arith.constant 0 : i32
    return %arg0, %c0_i32 : i32, i32
  }
}

</mosaic_0001>

<bundles_post_ra>
// kernel: tpu_custom_call.1
= control target key start
LH: loop header
LB: loop body
LE: loop exit
PB: predicated region body
PF: predicated region fallthrough
CT: control target
= control target key end

     0   :  { %10 = vsyncpa [#allocation3], 0  ;;  %s1161_s0 = inlined_call_operand.hbm [shape: f32[16,136], index: 0, kind: input, shape index: {}]   ;;  %s1162_s1 = inlined_call_operand.hbm [shape: bf16[136,256], index: 1, kind: input, shape index: {}]   ;;  %s1163_s2 = inlined_call_operand.vmem [shape: f32[1,256], index: 2, kind: input, shape index: {}]   ;;  %s1164_s3 = inlined_call_operand.hbm [shape: bf16[256,512], index: 3, kind: input, shape index: {}]   ;;  %s1165_s4 = inlined_call_operand.vmem [shape: f32[1,512], index: 4, kind: input, shape index: {}]   ;;  %s1166_s5 = inlined_call_operand.hbm [shape: f32[16,512], index: 5, kind: output, shape index: {}]  }
   0x1   :  { %11 = vsyncpa [#allocation6], 0 }
   0x2   :  { %12 = vsyncpa [#allocation4], 0  ;;  %s1067_s18 = smov [#allocation5]   ;;  %s973_s22 = scalar_lea.hbm %s1162_s1, 2176 }
   0x3   :  { %s30_s19 = sshll.u32 %s1067_s18, 4  ;;  %p974_p0 = scmp.ne.s32.totalorder %s1162_s1, %s973_s22  ;;  %s31_s19 = int_to_ptr.vmem [resolvable:$true] %s30_s19 }
   0x4   :  { %p977_p1 = scmp.lt.u32.totalorder %s973_s22, %s1162_s1 }
   0x6   :  { %p979_p2 = pnand %p977_p1, %p974_p0 }
   0x8   :  { %982 = shalt.err (!%p979_p2)
}
   0x9   :  { %s983_s27 = scalar_lea.vmem %s31_s19, 2176  ;;  %p988_p4 = scmp.lt.s32.totalorder %s31_s19, %s31_s19 }
   0xa   :  { %p984_p3 = scmp.ne.s32.totalorder %s31_s19, %s983_s27  ;;  %p989_p5 = scmp.lt.s32.totalorder %s983_s27, %s983_s27 }
   0xc   :  { %p990_p6 = por %p989_p5, %p988_p4 }
   0xe   :  { %p991_p7 = pnand %p990_p6, %p984_p3 }
  0x10   :  { %994 = shalt.err (!%p991_p7)
}
  0x11   :  { %s1068_s28 = smov 128   ;;  %s1069_s29 = smov 8  }
  0x12   :  { %36 = dma.hbm_to_vmem [thread:$0]  %s1162_s1, 2176, %s31_s19, [#allocation6], %s1068_s28, %s1068_s28, %s1069_s29  }
  0x13   :  { %s1070_s7 = smov [#allocation2]   ;;  %s995_s11 = scalar_lea.hbm %s1161_s0, 512 }
  0x14   :  { %s18_s8 = sshll.u32 %s1070_s7, 4  ;;  %p996_p8 = scmp.ne.s32.totalorder %s1161_s0, %s995_s11  ;;  %s19_s8 = int_to_ptr.vmem [resolvable:$true] %s18_s8 }
  0x15   :  { %p999_p9 = scmp.lt.u32.totalorder %s995_s11, %s1161_s0 }
  0x17   :  { %p1001_p10 = pnand %p999_p9, %p996_p8 }
  0x19   :  { %1004 = shalt.err (!%p1001_p10)
}
  0x1a   :  { %s1005_s16 = scalar_lea.vmem %s19_s8, 512  ;;  %p1010_p12 = scmp.lt.s32.totalorder %s19_s8, %s19_s8 }
  0x1b   :  { %p1006_p11 = scmp.ne.s32.totalorder %s19_s8, %s1005_s16  ;;  %p1011_p13 = scmp.lt.s32.totalorder %s1005_s16, %s1005_s16 }
  0x1d   :  { %p1012_p0 = por %p1011_p13, %p1010_p12 }
  0x1f   :  { %p1013_p1 = pnand %p1012_p0, %p1006_p11 }
  0x21   :  { %1016 = shalt.err (!%p1013_p1)
}
  0x22   :  { %s1071_s1 = smov 256   ;;  %s1072_s17 = smov 16  }
  0x23   :  { %24 = dma.hbm_to_vmem [thread:$0]  %s1161_s0, 512, %s19_s8, [#allocation3], %s1071_s1, %s1071_s1, %s1072_s17  }
  0x24   :  { %s1073_s20 = smov [#allocation7]   ;;  %s1017_s24 = scalar_lea.hbm %s1164_s3, 8192 }
  0x25   :  { %s44_s21 = sshll.u32 %s1073_s20, 4  ;;  %p1018_p2 = scmp.ne.s32.totalorder %s1164_s3, %s1017_s24  ;;  %s45_s21 = int_to_ptr.vmem [resolvable:$true] %s44_s21 }
  0x26   :  { %p1021_p3 = scmp.lt.u32.totalorder %s1017_s24, %s1164_s3 }
  0x28   :  { %p1023_p4 = pnand %p1021_p3, %p1018_p2 }
  0x2a   :  { %1026 = shalt.err (!%p1023_p4)
}
  0x2b   :  { %s1027_s29 = scalar_lea.vmem %s45_s21, 8192  ;;  %p1032_p6 = scmp.lt.s32.totalorder %s45_s21, %s45_s21 }
  0x2c   :  { %p1028_p5 = scmp.ne.s32.totalorder %s45_s21, %s1027_s29  ;;  %p1033_p7 = scmp.lt.s32.totalorder %s1027_s29, %s1027_s29 }
  0x2e   :  { %p1034_p8 = por %p1033_p7, %p1032_p6 }
  0x30   :  { %p1035_p9 = pnand %p1034_p8, %p1028_p5 }
  0x32   :  { %1038 = shalt.err (!%p1035_p9)
}
  0x33   :  { %50 = dma.hbm_to_vmem [thread:$0]  %s1164_s3, 8192, %s45_s21, [#allocation6], %s1071_s1, %s1071_s1, %s1072_s17  }
  0x34   :  { %1061 = dma.done.wait [#allocation3], 512  }
  0x35   :  { %1062 = vsyncadd [#allocation3], 4294966784 }
  0x36   :  { %1063 = dma.done.wait [#allocation6], 10368  }
  0x37   :  { %1064 = vsyncadd [#allocation6], 4294956928  ;;  %v851_v0 = vld [vmem:[#allocation5 + $0x4] ss:$8 sps:$4 sm:$0xff]   ;;  %v853_v1 = vld [vmem:[#allocation5] ss:$8 sps:$4 sm:$0xff]  }
  0x38   :  { %194 = vmatprep.subr.bf16.mxu0 %v851_v0  ;;  %v854_v2 = vld [vmem:[#allocation5 + $0x14] ss:$8 sps:$4 sm:$0xff]   ;;  %v856_v3 = vld [vmem:[#allocation5 + $0x10] ss:$8 sps:$4 sm:$0xff]   ;;  %v857_v4 = vld [vmem:[#allocation5 + $0x24] ss:$8 sps:$4 sm:$0xff]  }
  0x39   :  { %195 = vmatpush1.bf16.msra.mxu0 %v853_v1  ;;  %v859_v5 = vld [vmem:[#allocation5 + $0x20] ss:$8 sps:$4 sm:$0xff]   ;;  %v860_v6 = vld [vmem:[#allocation5 + $0x34] ss:$8 sps:$4 sm:$0xff]   ;;  %v862_v7 = vld [vmem:[#allocation5 + $0x30] ss:$8 sps:$4 sm:$0xff]  }
  0x3a   :  { %196 = vmatprep.subr.bf16.mxu0 %v854_v2  ;;  %v64_v8 = vld [vmem:[#allocation2 + $0x8] sm:$0xff]  ;;  %v66_v9 = vld [vmem:[#allocation2 + $0x18] sm:$0xff]  ;;  %vm183_vm0 = vcmask 64512   ;;  %v85_v26 = vld [vmem:[#allocation5 + $0x80] sm:$0xff]  ;;  %vm187_vm1 = vcmask 1043456   ;;  %s1074_s8 = smov [#allocation8]  }
  0x3b   :  { %v863_v10 = vld [vmem:[#allocation5 + $0x44] ss:$8 sps:$4 sm:$0xff]   ;;  %v68_v11 = vpack.c.bf16 %v66_v9, %v64_v8  ;;  %v865_v13 = vld [vmem:[#allocation5 + $0x40] ss:$8 sps:$4 sm:$0xff]   ;;  %v866_v16 = vld [vmem:[#allocation5 + $0x54] ss:$8 sps:$4 sm:$0xff]   ;;  %v774_v29 = vcombine.high %v85_v26, %v85_v26  ;;  %v773_v30 = vcombine.low %v85_v26, %v85_v26  ;;  %v88_v26 = vlaneseq }
  0x3c   :  { %v877_v12 = vld [vmem:[#allocation7 + $0x4] ss:$16 sps:$4 sm:$0xff]   ;;  %v882_v14 = vld [vmem:[#allocation7] ss:$16 sps:$4 sm:$0xff]   ;;  %v63_v33 = vld [vmem:[#allocation2] sm:$0xff]  ;;  %s744_s9 = sshll.u32 %s1074_s8, 4  ;;  %s745_s9 = int_to_ptr.vmem [resolvable:$true] %s744_s9 }
  0x3d   :  { %197 = vmatpush1.bf16.msra.mxu0 %v856_v3  ;;  %776 = vmatprep.mubr.msk.bf16.mxu0 %vm183_vm0, %v68_v11  ;;  %v883_v15 = vld [vmem:[#allocation7 + $0x24] ss:$16 sps:$4 sm:$0xff]   ;;  %v888_v17 = vld [vmem:[#allocation7 + $0x20] ss:$16 sps:$4 sm:$0xff]   ;;  %v65_v34 = vld [vmem:[#allocation2 + $0x10] sm:$0xff]  ;;  %v189_v36 = vsel %vm187_vm1, %v773_v30, 0  ;;  %p1044_p11 = scmp.lt.s32.totalorder %s745_s9, %s745_s9 }
  0x3e   :  { %198 = vmatprep.subr.bf16.mxu0 %v857_v4  ;;  %645 = vmatprep.subr.bf16.mxu1 %v877_v12  ;;  %v889_v18 = vld [vmem:[#allocation7 + $0x44] ss:$16 sps:$4 sm:$0xff]   ;;  %v868_v19 = vld [vmem:[#allocation5 + $0x50] ss:$8 sps:$4 sm:$0xff]   ;;  %v871_v23 = vld [vmem:[#allocation5 + $0x60] ss:$8 sps:$4 sm:$0xff]   ;;  %v67_v39 = vpack.c.bf16 %v65_v34, %v63_v33 }
  0x3f   :  { %646 = vmatpush1.bf16.msra.mxu1 %v882_v14  ;;  %v869_v20 = vld [vmem:[#allocation5 + $0x64] ss:$8 sps:$4 sm:$0xff]   ;;  %v894_v21 = vld [vmem:[#allocation7 + $0x40] ss:$16 sps:$4 sm:$0xff]   ;;  %v872_v24 = vld [vmem:[#allocation5 + $0x74] ss:$8 sps:$4 sm:$0xff]  }
  0x40   :  { %647 = vmatprep.subr.bf16.mxu1 %v883_v15  ;;  %v895_v22 = vld [vmem:[#allocation7 + $0x64] ss:$16 sps:$4 sm:$0xff]   ;;  %v900_v25 = vld [vmem:[#allocation7 + $0x60] ss:$16 sps:$4 sm:$0xff]   ;;  %v881_v35 = vld [vmem:[#allocation7 + $0xc] ss:$16 sps:$4 sm:$0xff]  }
  0x41   :  { %199 = vmatpush1.bf16.msra.mxu0 %v859_v5  ;;  %v901_v27 = vld [vmem:[#allocation7 + $0x84] ss:$16 sps:$4 sm:$0xff]   ;;  %v874_v28 = vld [vmem:[#allocation5 + $0x70] ss:$8 sps:$4 sm:$0xff]   ;;  %v887_v41 = vld [vmem:[#allocation7 + $0x2c] ss:$16 sps:$4 sm:$0xff]  }
  0x42   :  { %200 = vmatprep.subr.bf16.mxu0 %v860_v6  ;;  %v906_v31 = vld [vmem:[#allocation7 + $0x80] ss:$16 sps:$4 sm:$0xff]   ;;  %v907_v32 = vld [vmem:[#allocation7 + $0xa4] ss:$16 sps:$4 sm:$0xff]   ;;  %v879_v40 = vld [vmem:[#allocation7 + $0x8] ss:$16 sps:$4 sm:$0xff]  }
  0x43   :  { %648 = vmatpush1.bf16.msra.mxu1 %v888_v17  ;;  %v912_v37 = vld [vmem:[#allocation7 + $0xa0] ss:$16 sps:$4 sm:$0xff]   ;;  %v913_v38 = vld [vmem:[#allocation7 + $0xc4] ss:$16 sps:$4 sm:$0xff]   ;;  %v885_v44 = vld [vmem:[#allocation7 + $0x28] ss:$16 sps:$4 sm:$0xff]  }
  0x44   :  { %649 = vmatprep.subr.bf16.mxu1 %v889_v18  ;;  %v918_v42 = vld [vmem:[#allocation7 + $0xc0] ss:$16 sps:$4 sm:$0xff]   ;;  %v919_v43 = vld [vmem:[#allocation7 + $0xe4] ss:$16 sps:$4 sm:$0xff]   ;;  %v893_v45 = vld [vmem:[#allocation7 + $0x4c] ss:$16 sps:$4 sm:$0xff]  }
  0x45   :  { %201 = vmatpush1.bf16.msra.mxu0 %v862_v7  ;;  %v924_v46 = vld [vmem:[#allocation7 + $0xe0] ss:$16 sps:$4 sm:$0xff]   ;;  %v925_v47 = vld [vmem:[#allocation7 + $0x104] ss:$16 sps:$4 sm:$0xff]   ;;  %v891_v48 = vld [vmem:[#allocation7 + $0x48] ss:$16 sps:$4 sm:$0xff]  }
  0x46   :  { %202 = vmatprep.subr.bf16.mxu0 %v863_v10  ;;  %v899_v49 = vld [vmem:[#allocation7 + $0x6c] ss:$16 sps:$4 sm:$0xff]   ;;  %v930_v50 = vld [vmem:[#allocation7 + $0x100] ss:$16 sps:$4 sm:$0xff]   ;;  %v931_v51 = vld [vmem:[#allocation7 + $0x124] ss:$16 sps:$4 sm:$0xff]  }
  0x47   :  { %650 = vmatpush1.bf16.msra.mxu1 %v894_v21  ;;  %v897_v52 = vld [vmem:[#allocation7 + $0x68] ss:$16 sps:$4 sm:$0xff]   ;;  %v905_v53 = vld [vmem:[#allocation7 + $0x8c] ss:$16 sps:$4 sm:$0xff]   ;;  %v936_v54 = vld [vmem:[#allocation7 + $0x120] ss:$16 sps:$4 sm:$0xff]  }
  0x48   :  { %651 = vmatprep.subr.bf16.mxu1 %v895_v22  ;;  %v903_v55 = vld [vmem:[#allocation7 + $0x88] ss:$16 sps:$4 sm:$0xff]   ;;  %v937_v56 = vld [vmem:[#allocation7 + $0x144] ss:$16 sps:$4 sm:$0xff]   ;;  %v911_v57 = vld [vmem:[#allocation7 + $0xac] ss:$16 sps:$4 sm:$0xff]  }
  0x49   :  { %203 = vmatpush1.bf16.msra.mxu0 %v865_v13  ;;  %v942_v58 = vld [vmem:[#allocation7 + $0x140] ss:$16 sps:$4 sm:$0xff]   ;;  %v943_v59 = vld [vmem:[#allocation7 + $0x164] ss:$16 sps:$4 sm:$0xff]   ;;  %v909_v60 = vld [vmem:[#allocation7 + $0xa8] ss:$16 sps:$4 sm:$0xff]  }
  0x4a   :  { %204 = vmatprep.subr.bf16.mxu0 %v866_v16  ;;  %v917_v61 = vld [vmem:[#allocation7 + $0xcc] ss:$16 sps:$4 sm:$0xff]   ;;  %v948_v62 = vld [vmem:[#allocation7 + $0x160] ss:$16 sps:$4 sm:$0xff]   ;;  %v949_v63 = vld [vmem:[#allocation7 + $0x184] ss:$16 sps:$4 sm:$0xff]  }
  0x4b   :  { %652 = vmatpush1.bf16.msra.mxu1 %v900_v25  ;;  %v915_v0 = vld [vmem:[#allocation7 + $0xc8] ss:$16 sps:$4 sm:$0xff]   ;;  %v923_v1 = vld [vmem:[#allocation7 + $0xec] ss:$16 sps:$4 sm:$0xff]   ;;  %v954_v2 = vld [vmem:[#allocation7 + $0x180] ss:$16 sps:$4 sm:$0xff]  }
  0x4c   :  { %653 = vmatprep.subr.bf16.mxu1 %v901_v27  ;;  %v955_v3 = vld [vmem:[#allocation7 + $0x1a4] ss:$16 sps:$4 sm:$0xff]   ;;  %v921_v4 = vld [vmem:[#allocation7 + $0xe8] ss:$16 sps:$4 sm:$0xff]   ;;  %v929_v5 = vld [vmem:[#allocation7 + $0x10c] ss:$16 sps:$4 sm:$0xff]  }
  0x4d   :  { %205 = vmatpush1.bf16.msra.mxu0 %v868_v19  ;;  %v960_v6 = vld [vmem:[#allocation7 + $0x1a0] ss:$16 sps:$4 sm:$0xff]   ;;  %v927_v7 = vld [vmem:[#allocation7 + $0x108] ss:$16 sps:$4 sm:$0xff]   ;;  %v935_v8 = vld [vmem:[#allocation7 + $0x12c] ss:$16 sps:$4 sm:$0xff]  }
  0x4e   :  { %206 = vmatprep.subr.bf16.mxu0 %v869_v20  ;;  %v933_v9 = vld [vmem:[#allocation7 + $0x128] ss:$16 sps:$4 sm:$0xff]   ;;  %v941_v10 = vld [vmem:[#allocation7 + $0x14c] ss:$16 sps:$4 sm:$0xff]   ;;  %v961_v18 = vld [vmem:[#allocation7 + $0x1c4] ss:$16 sps:$4 sm:$0xff]  }
  0x4f   :  { %654 = vmatpush1.bf16.msra.mxu1 %v906_v31  ;;  %v939_v11 = vld [vmem:[#allocation7 + $0x148] ss:$16 sps:$4 sm:$0xff]   ;;  %v947_v12 = vld [vmem:[#allocation7 + $0x16c] ss:$16 sps:$4 sm:$0xff]   ;;  %v966_v21 = vld [vmem:[#allocation7 + $0x1c0] ss:$16 sps:$4 sm:$0xff]  }
  0x50   :  { %655 = vmatprep.subr.bf16.mxu1 %v907_v32  ;;  %v945_v13 = vld [vmem:[#allocation7 + $0x168] ss:$16 sps:$4 sm:$0xff]   ;;  %v953_v14 = vld [vmem:[#allocation7 + $0x18c] ss:$16 sps:$4 sm:$0xff]   ;;  %v967_v22 = vld [vmem:[#allocation7 + $0x1e4] ss:$16 sps:$4 sm:$0xff]  }
  0x51   :  { %207 = vmatpush1.bf16.msra.mxu0 %v871_v23  ;;  %v951_v15 = vld [vmem:[#allocation7 + $0x188] ss:$16 sps:$4 sm:$0xff]   ;;  %v959_v16 = vld [vmem:[#allocation7 + $0x1ac] ss:$16 sps:$4 sm:$0xff]   ;;  %v972_v25 = vld [vmem:[#allocation7 + $0x1e0] ss:$16 sps:$4 sm:$0xff]  }
  0x52   :  { %208 = vmatprep.subr.bf16.mxu0 %v872_v24  ;;  %v957_v17 = vld [vmem:[#allocation7 + $0x1a8] ss:$16 sps:$4 sm:$0xff]   ;;  %v965_v19 = vld [vmem:[#allocation7 + $0x1cc] ss:$16 sps:$4 sm:$0xff]   ;;  %v89_v27 = vshrl.u32 %v88_v26, 7 }
  0x53   :  { %656 = vmatpush1.bf16.msra.mxu1 %v912_v37  ;;  %v963_v20 = vld [vmem:[#allocation7 + $0x1c8] ss:$16 sps:$4 sm:$0xff]   ;;  %v971_v23 = vld [vmem:[#allocation7 + $0x1ec] ss:$16 sps:$4 sm:$0xff]  }
  0x54   :  { %657 = vmatprep.subr.bf16.mxu1 %v913_v38  ;;  %v969_v24 = vld [vmem:[#allocation7 + $0x1e8] ss:$16 sps:$4 sm:$0xff]   ;;  %v94_v30 = vsub.s32 1, %v89_v27 }
  0x55   :  { %209 = vmatpush1.bf16.msra.mxu0 %v874_v28  ;;  %v90_v28 = vsub.s32 0, %v89_v27 }
  0x56   :  { %775 = vmatprep.subr.msk.bf16.mxu0 %vm187_vm1, %v774_v29  ;;  %v86_v29 = vld [vmem:[%s1163_s2] sm:$0x3] }
  0x57   :  { %658 = vmatpush1.bf16.msra.mxu1 %v918_v42  ;;  %v91_v31 = vrot.slane %v86_v29, %v90_v28  ;;  %v95_v33 = vrot.slane %v86_v29, %v94_v30 }
  0x58   :  { %659 = vmatprep.subr.bf16.mxu1 %v919_v43  ;;  %v315_v43 = vsub.s32 2, %v89_v27 }
  0x59   :  { %211 = vmatpush1.bf16.msra.mxu0 %v189_v36 }
  0x5a   :  { %688 = vmatprep.subr.bf16.mxu0 %v881_v35 }
  0x5b   :  { %660 = vmatpush1.bf16.msra.mxu1 %v924_v46 }
  0x5c   :  { %227 = vmatmul.mubr.bf16.vlgmr.msra.gmra.mrb[0].mxu0 %v67_v39  ;;  %661 = vmatprep.subr.bf16.mxu1 %v925_v47 }
  0x5d   :  { %689 = vmatpush1.bf16.msra.mxu0 %v879_v40 }
  0x5e   :  { %690 = vmatprep.subr.bf16.mxu0 %v887_v41 }
  0x5f   :  { %662 = vmatpush1.bf16.msra.mxu1 %v930_v50 }
  0x60   :  { %663 = vmatprep.subr.bf16.mxu1 %v931_v51 }
  0x61   :  { %691 = vmatpush1.bf16.msra.mxu0 %v885_v44  ;;  %v303_v44 = vld [vmem:[%s1165_s4] sm:$0xf]  ;;  %s1039_s4 = scalar_lea.vmem %s745_s9, 1024 }
  0x62   :  { %692 = vmatprep.subr.bf16.mxu0 %v893_v45  ;;  %v319_v45 = vsub.s32 3, %v89_v27  ;;  %v308_v46 = vrot.slane %v303_v44, %v90_v28  ;;  %v316_v47 = vrot.slane %v303_v44, %v315_v43  ;;  %p1040_p10 = scmp.ne.s32.totalorder %s745_s9, %s1039_s4  ;;  %p1045_p12 = scmp.lt.s32.totalorder %s1039_s4, %s1039_s4 }
  0x63   :  { %664 = vmatpush1.bf16.msra.mxu1 %v936_v54 }
  0x64   :  { %665 = vmatprep.subr.bf16.mxu1 %v937_v56  ;;  %p1046_p13 = por %p1045_p12, %p1044_p11 }
  0x65   :  { %693 = vmatpush1.bf16.msra.mxu0 %v891_v48  ;;  %v312_v48 = vrot.slane %v303_v44, %v94_v30 }
  0x66   :  { %694 = vmatprep.subr.bf16.mxu0 %v899_v49  ;;  %v320_v49 = vrot.slane %v303_v44, %v319_v45  ;;  %p1047_p0 = pnand %p1046_p13, %p1040_p10 }
  0x67   :  { %666 = vmatpush1.bf16.msra.mxu1 %v942_v58 }
  0x68   :  { %667 = vmatprep.subr.bf16.mxu1 %v943_v59 }
  0x69   :  { %695 = vmatpush1.bf16.msra.mxu0 %v897_v52 }
  0x6a   :  { %696 = vmatprep.subr.bf16.mxu0 %v905_v53 }
  0x6b   :  { %668 = vmatpush1.bf16.msra.mxu1 %v948_v62 }
  0x6c   :  { %669 = vmatprep.subr.bf16.mxu1 %v949_v63 }
  0x6d   :  { %697 = vmatpush1.bf16.msra.mxu0 %v903_v55 }
  0x6e   :  { %698 = vmatprep.subr.bf16.mxu0 %v911_v57 }
  0x6f   :  { %670 = vmatpush1.bf16.msra.mxu1 %v954_v2 }
  0x70   :  { %671 = vmatprep.subr.bf16.mxu1 %v955_v3 }
  0x71   :  { %699 = vmatpush1.bf16.msra.mxu0 %v909_v60 }
  0x72   :  { %700 = vmatprep.subr.bf16.mxu0 %v917_v61 }
  0x73   :  { %672 = vmatpush1.bf16.msra.mxu1 %v960_v6 }
  0x74   :  { %673 = vmatprep.subr.bf16.mxu1 %v961_v18 }
  0x75   :  { %701 = vmatpush1.bf16.msra.mxu0 %v915_v0 }
  0x76   :  { %702 = vmatprep.subr.bf16.mxu0 %v923_v1 }
  0x77   :  { %674 = vmatpush1.bf16.msra.mxu1 %v966_v21 }
  0x78   :  { %675 = vmatprep.subr.bf16.mxu1 %v967_v22 }
  0x79   :  { %703 = vmatpush1.bf16.msra.mxu0 %v921_v4 }
  0x7a   :  { %704 = vmatprep.subr.bf16.mxu0 %v929_v5 }
  0x7b   :  { %676 = vmatpush1.bf16.msra.mxu1 %v972_v25 }
  0x7d   :  { %705 = vmatpush1.bf16.msra.mxu0 %v927_v7 }
  0x7e   :  { %706 = vmatprep.subr.bf16.mxu0 %v935_v8 }
  0x81   :  { %707 = vmatpush1.bf16.msra.mxu0 %v933_v9 }
  0x82   :  { %708 = vmatprep.subr.bf16.mxu0 %v941_v10 }
  0x85   :  { %709 = vmatpush1.bf16.msra.mxu0 %v939_v11 }
  0x86   :  { %710 = vmatprep.subr.bf16.mxu0 %v947_v12 }
  0x89   :  { %711 = vmatpush1.bf16.msra.mxu0 %v945_v13 }
  0x8a   :  { %712 = vmatprep.subr.bf16.mxu0 %v953_v14 }
  0x8d   :  { %713 = vmatpush1.bf16.msra.mxu0 %v951_v15 }
  0x8e   :  { %714 = vmatprep.subr.bf16.mxu0 %v959_v16 }
  0x91   :  { %715 = vmatpush1.bf16.msra.mxu0 %v957_v17 }
  0x92   :  { %716 = vmatprep.subr.bf16.mxu0 %v965_v19 }
  0x95   :  { %717 = vmatpush1.bf16.msra.mxu0 %v963_v20 }
  0x96   :  { %718 = vmatprep.subr.bf16.mxu0 %v971_v23 }
  0x99   :  { %719 = vmatpush1.bf16.msra.mxu0 %v969_v24 }
 0x12f   :  { %v228_v32 = vpop.f32.mrb[0].mxu0 }
 0x130   :  { %v230_v34 = vpop.f32.mrb[1].mxu0  ;;  %v229_v36 = vadd.f32 %v228_v32, %v91_v31 }
 0x131   :  { %v232_v35 = vpop.f32.mrb[2].mxu0  ;;  %v231_v39 = vadd.f32 %v230_v34, %v95_v33 }
 0x132   :  { %v233_v37 = vadd.f32 %v232_v35, %v91_v31  ;;  %v234_v38 = vpop.f32.mrb[3].mxu0 }
 0x133   :  { %v235_v40 = vadd.f32 %v234_v38, %v95_v33 }
 0x134   :  { %v237_v41 = vpack.c.bf16 %v233_v37, %v229_v36 }
 0x135   :  { %v238_v42 = vpack.c.bf16 %v235_v40, %v231_v39 }
 0x137   :  { %677 = vmatprep.mubr.bf16.mxu1 %v238_v42  ;;  %720 = vmatprep.mubr.bf16.mxu0 %v238_v42 }
 0x138   :  { %678 = vmatmul.mubr.bf16.vlgmr.msra.gmra.mrb[0].mxu1 %v237_v41  ;;  %721 = vmatmul.mubr.bf16.vlgmr.msra.gmra.mrb[4].mxu0 %v237_v41 }
 0x20b   :  { %v679_v50 = vpop.f32.mrb[0].mxu1  ;;  %v722_v51 = vpop.f32.mrb[4].mxu0 }
 0x20c   :  { %v680_v52 = vadd.f32 %v679_v50, %v308_v46  ;;  %v723_v53 = vadd.f32 %v722_v51, %v316_v47  ;;  %v681_v54 = vpop.f32.mrb[1].mxu1  ;;  %v724_v55 = vpop.f32.mrb[5].mxu0 }
 0x20d   :  { %v682_v56 = vadd.f32 %v681_v54, %v312_v48  ;;  %v725_v57 = vadd.f32 %v724_v55, %v320_v49  ;;  %v683_v58 = vpop.f32.mrb[2].mxu1  ;;  %v726_v59 = vpop.f32.mrb[6].mxu0 }
 0x20e   :  { %731 = vst [vmem:[#allocation8] sm:$0xff] %v680_v52  ;;  %733 = vst [vmem:[#allocation8 + $0x10] sm:$0xff] %v723_v53  ;;  %v684_v60 = vadd.f32 %v683_v58, %v308_v46  ;;  %v727_v61 = vadd.f32 %v726_v59, %v316_v47  ;;  %v685_v62 = vpop.f32.mrb[3].mxu1  ;;  %v728_v63 = vpop.f32.mrb[7].mxu0 }
 0x20f   :  { %732 = vst [vmem:[#allocation8 + $0x8] sm:$0xff] %v682_v56  ;;  %734 = vst [vmem:[#allocation8 + $0x18] sm:$0xff] %v725_v57  ;;  %v686_v0 = vadd.f32 %v685_v62, %v312_v48  ;;  %v729_v1 = vadd.f32 %v728_v63, %v320_v49 }
 0x210   :  { %735 = vst [vmem:[#allocation8 + $0x20] sm:$0xff] %v684_v60  ;;  %737 = vst [vmem:[#allocation8 + $0x30] sm:$0xff] %v727_v61 }
 0x211   :  { %736 = vst [vmem:[#allocation8 + $0x28] sm:$0xff] %v686_v0  ;;  %738 = vst [vmem:[#allocation8 + $0x38] sm:$0xff] %v729_v1 }
 0x212   :  { %1050 = shalt.err (!%p1047_p0)
}
 0x213   :  { %s1051_s12 = scalar_lea.hbm %s1166_s5, 1024 }
 0x214   :  { %p1052_p1 = scmp.ne.s32.totalorder %s1166_s5, %s1051_s12  ;;  %p1055_p2 = scmp.lt.u32.totalorder %s1051_s12, %s1166_s5 }
 0x216   :  { %p1057_p3 = pnand %p1055_p2, %p1052_p1 }
 0x218   :  { %1060 = shalt.err (!%p1057_p3)
}
 0x219   :  { %s1075_s1 = smov 512   ;;  %s1076_s17 = smov 32  }
 0x21a   :  { %750 = dma.vmem_to_hbm [thread:$0]  %s745_s9, 1024, %s1166_s5, [#allocation4], %s1075_s1, %s1075_s1, %s1076_s17  }
 0x21b   :  { %1065 = dma.done.wait [#allocation4], 1024  }
 0x21c   :  { %1066 = vsyncadd [#allocation4], 4294966272 }
 0x21d   :  { %754 = vsyncpa [#allocation3], 1 }
 0x21e   :  { %755 = vsyncpa [#allocation6], 1 }
 0x21f   :  { %756 = vsyncpa [#allocation4], 1 }

</bundles_post_ra>
